<compile_context>
chip_gen: v7x
topology: tpu7x:2x2x1
jax: 0.10.0
libtpu: 0.0.40
codegen_flags: <defaults>
</compile_context>

<pallas_src>
import functools
import math

import jax
import jax.numpy as jnp
from jax.experimental import pallas as pl
from jax.experimental.pallas import tpu as pltpu

# Module constants (mirror GeM.__init__ / gem()).
GEM_P = max(0.1, 3.0)        # torch.clamp(Parameter(ones(1) * 3), min=0.1)
GEM_EPS = 1e-6               # GeM() default eps
GEM_CLAMP_MAX = 10000.0      # gem() clamps max=10000.0

_TARGET_BLOCK_BYTES = 2 << 20   # aim ~1-2 MiB per pipelined input buffer
_MAX_BLOCK_BYTES = 4 << 20      # hard cap (x2 double buffer fits every gen)
_DEFAULT_SCOPED_VMEM = 16 << 20 # smallest default (v5e)


# ---------------------------------------------------------------------------
# Kernel
# ---------------------------------------------------------------------------
def _gem_kernel(p, eps, inv_hw, x_ref, o_ref):
    """One (Bblk, Cblk) tile per grid step.

    x_ref: (Bblk, Cblk, HW) block of the NCHW input (C on sublanes, HW on lanes)
    o_ref: (Bblk, Cblk, 1)  pooled output block
    """
    x = x_ref[...].astype(jnp.float32)                # (Bblk, Cblk, HW)
    x = jnp.clip(x, eps, GEM_CLAMP_MAX)               # clamp(min=eps, max=1e4)

    # x ** p : integer p -> repeated VPU multiplies (no transcendentals over
    # the full feature map).  Fractional p -> x**floor(p) * exp(frac*log(x))
    # so only one EUP pass over the map remains.
    if float(p).is_integer() and 1.0 <= p <= 8.0:
        xp = x
        for _ in range(int(p) - 1):
            xp = xp * x
    else:
        ip = int(math.floor(p))
        frac = p - ip
        xp = x if ip >= 1 else jnp.ones_like(x)
        for _ in range(max(ip - 1, 0)):
            xp = xp * x
        if frac > 0.0:
            xp = xp * jnp.exp(frac * jnp.log(x))

    # avg_pool2d over the full spatial extent == mean over the lane axis.
    pooled = jnp.sum(xp, axis=-1, keepdims=True) * inv_hw     # (Bblk, Cblk, 1)

    # pooled ** (1/p): EUP exp/log on the tiny pooled result only.
    # torch.abs(...) dropped: pooled >= eps**p > 0 (eps > 0 asserted upstream).
    if p != 1.0:
        pooled = jnp.exp(jnp.log(pooled) * (1.0 / p))

    o_ref[...] = pooled.astype(o_ref.dtype)


# ---------------------------------------------------------------------------
# Tiling helpers
# ---------------------------------------------------------------------------
def _largest_divisor_leq(n, cap, multiple=1):
    """Largest d | n with d <= cap and d % multiple == 0, or None."""
    best = None
    cap = min(cap, n)
    for d in range(1, cap + 1):
        if n % d == 0 and d % multiple == 0:
            best = d
    return best


def _choose_tiles(B, C, hw, itemsize):
    """Pick (Bblk, Cblk) so the input block lands in the ~1-4 MiB window."""
    sub_mult = max(8, 32 // itemsize)        # sublane multiple (f32:8, bf16:16)
    img_bytes = C * hw * itemsize

    if img_bytes > _MAX_BLOCK_BYTES:
        # Large feature map: channel-tile.
        Bblk = 1
        cap_c = max(1, _MAX_BLOCK_BYTES // (hw * itemsize))
        Cblk = _largest_divisor_leq(C, cap_c, multiple=sub_mult)
        if Cblk is None:
            Cblk = C                          # full-dim block is always legal
    else:
        # Small feature map: merge batch images, but keep >= 2 grid steps
        # when B >= 2 (v7x dual-TC + pipeline overlap).
        Cblk = C
        min_steps = 2 if B >= 2 else 1
        cap_b = max(1, min(_TARGET_BLOCK_BYTES // max(img_bytes, 1),
                           B // min_steps))
        Bblk = _largest_divisor_leq(B, cap_b) or 1
    return Bblk, Cblk


# ---------------------------------------------------------------------------
# Wrapper (the GeM.forward equivalent)
# ---------------------------------------------------------------------------
def gem(x, p=3.0, eps=GEM_EPS):
    """GeM pooling. x: (B, C, H, W) -> (B, C, 1, 1), matching the torch module."""
    B, C, H, W = x.shape
    p = max(float(p), 0.1)                    # torch.clamp(self.p, min=0.1)
    eps = float(eps)
    assert eps > 0.0, "abs-elision in the kernel requires eps > 0"
    hw = H * W
    itemsize = jnp.dtype(x.dtype).itemsize
    x3 = x.reshape(B, C, hw)                  # free contiguous reshape

    Bblk, Cblk = _choose_tiles(B, C, hw, itemsize)
    grid = (B // Bblk, C // Cblk)

    # Only raise the scoped-VMEM limit in the fallback where a clean channel
    # divisor did not exist and the double-buffered block would overflow.
    block_bytes = Bblk * Cblk * hw * itemsize
    vmem_need = 2 * block_bytes + 2 * Bblk * Cblk * 4 + (1 << 20)
    vmem_limit = vmem_need if vmem_need > _DEFAULT_SCOPED_VMEM else None

    cost = pl.CostEstimate(
        flops=int(4 * B * C * hw),            # clamp + cube + reduce
        transcendentals=int(2 * B * C),       # log/exp on the pooled result
        bytes_accessed=int(B * C * hw * itemsize + B * C * itemsize),
    )

    kernel = functools.partial(_gem_kernel, p, eps, 1.0 / hw)
    out = pl.pallas_call(
        kernel,
        out_shape=jax.ShapeDtypeStruct((B, C, 1), x.dtype),
        grid=grid,
        in_specs=[pl.BlockSpec((Bblk, Cblk, hw), lambda b, c: (b, c, 0))],
        out_specs=pl.BlockSpec((Bblk, Cblk, 1), lambda b, c: (b, c, 0)),
        compiler_params=pltpu.CompilerParams(
            dimension_semantics=("parallel", "parallel"),
            vmem_limit_bytes=vmem_limit),
        cost_estimate=cost,
    )(x3)
    return out.reshape(B, C, 1, 1)


# ---------------------------------------------------------------------------
if __name__ == "__main__":
    def _ref(x, p=GEM_P, eps=GEM_EPS):
        xr = jnp.power(jnp.clip(x.astype(jnp.float32), eps, GEM_CLAMP_MAX), p)
        return jnp.abs(jnp.power(jnp.mean(xr, axis=(2, 3), keepdims=True),
                                 1.0 / p))

    # Case 1: small CNN-feature-map shape, f32 (batch-merged / 2-step grid).
    key = jax.random.PRNGKey(0)
    B, C, H, W = 2, 256, 16, 16
    x = jax.random.normal(key, (B, C, H, W), jnp.float32)
    y = jax.block_until_ready(jax.jit(gem)(x))
    assert y.shape == (B, C, 1, 1)
    assert bool(jnp.all(jnp.isfinite(y)))
    ref = _ref(x)
    assert bool(jnp.allclose(y, ref, rtol=1e-4, atol=1e-6)), (
        float(jnp.max(jnp.abs(y - ref))))

    # Case 2: bf16 passthrough (f32 accumulation inside the kernel).
    xb = jax.random.normal(jax.random.PRNGKey(1), (1, 512, 32, 32),
                           jnp.bfloat16)
    yb = jax.block_until_ready(jax.jit(gem)(xb))
    assert yb.shape == (1, 512, 1, 1) and yb.dtype == jnp.bfloat16
    refb = _ref(xb)
    assert bool(jnp.allclose(yb.astype(jnp.float32), refb,
                             rtol=2e-2, atol=2e-3)), (
        float(jnp.max(jnp.abs(yb.astype(jnp.float32) - refb))))

    print("KERNEL_OK")
</pallas_src>

<mosaic_0001>
module attributes {stable_mosaic.version = 11 : i64} {
  func.func @_gem_kernel(%arg0: i32, %arg1: i32, %arg2: memref<1x256x256xf32, #tpu.memory_space<vmem>>, %arg3: memref<1x256x1xf32, #tpu.memory_space<vmem>>) attributes {dimension_semantics = [#tpu.dimension_semantics<parallel>, #tpu.dimension_semantics<parallel>], iteration_bounds = array<i64: 2, 1>, scalar_prefetch = 0 : i64, scratch_operands = 0 : i64, tpu.core_type = #tpu.core_type<tc>, window_params = [{transform_indices = @transform_0, window_bounds = array<i64: 1, 256, 256>}, {transform_indices = @transform_1, window_bounds = array<i64: 1, 256, 1>}]} {
    %c0 = arith.constant 0 : index
    %c0_0 = arith.constant 0 : index
    %c0_1 = arith.constant 0 : index
    %0 = vector.load %arg2[%c0, %c0_0, %c0_1] : memref<1x256x256xf32, #tpu.memory_space<vmem>>, vector<1x256x256xf32>
    %cst = arith.constant 9.99999997E-7 : f32
    %cst_2 = arith.constant 1.000000e+04 : f32
    %1 = vector.broadcast %cst : f32 to vector<1x256x256xf32>
    %2 = arith.maximumf %1, %0 : vector<1x256x256xf32>
    %3 = vector.broadcast %cst_2 : f32 to vector<1x256x256xf32>
    %4 = arith.minimumf %3, %2 : vector<1x256x256xf32>
    %5 = arith.mulf %4, %4 : vector<1x256x256xf32>
    %6 = arith.mulf %5, %4 : vector<1x256x256xf32>
    %cst_3 = arith.constant dense<0.000000e+00> : vector<1x256xf32>
    %7 = vector.multi_reduction <add>, %6, %cst_3 [2] : vector<1x256x256xf32> to vector<1x256xf32>
    %8 = vector.shape_cast %7 : vector<1x256xf32> to vector<1x256x1xf32>
    %cst_4 = arith.constant 3.906250e-03 : f32
    %9 = vector.broadcast %cst_4 : f32 to vector<1x256x1xf32>
    %10 = arith.mulf %8, %9 : vector<1x256x1xf32>
    %11 = math.log %10 : vector<1x256x1xf32>
    %cst_5 = arith.constant 0.333333343 : f32
    %12 = vector.broadcast %cst_5 : f32 to vector<1x256x1xf32>
    %13 = arith.mulf %11, %12 : vector<1x256x1xf32>
    %14 = math.exp %13 : vector<1x256x1xf32>
    %c0_6 = arith.constant 0 : index
    %c0_7 = arith.constant 0 : index
    %c0_8 = arith.constant 0 : index
    %15 = vector.load %arg3[%c0_6, %c0_7, %c0_8] : memref<1x256x1xf32, #tpu.memory_space<vmem>>, vector<1x256x1xf32>
    tpu.vector_store %arg3[%c0_6, %c0_7, %c0_8], %14 {strides = array<i32>} : memref<1x256x1xf32, #tpu.memory_space<vmem>>, vector<1x256x1xf32>,
    return
  }
  func.func @transform_0(%arg0: i32, %arg1: i32) -> (i32, i32, i32) {
    %c0_i32 = arith.constant 0 : i32
    %c0_i32_0 = arith.constant 0 : i32
    return %arg0, %arg1, %c0_i32 : i32, i32, i32
  }
  func.func @transform_1(%arg0: i32, %arg1: i32) -> (i32, i32, i32) {
    %c0_i32 = arith.constant 0 : i32
    %c0_i32_0 = arith.constant 0 : i32
    return %arg0, %arg1, %c0_i32 : i32, i32, i32
  }
}

</mosaic_0001>

<bundles_post_ra>
// kernel: gem.1
= control target key start
LH: loop header
LB: loop body
LE: loop exit
PB: predicated region body
PF: predicated region fallthrough
CT: control target
= control target key end

     0   :  { %s1089_s6 = smov 0   ;;  %s1091_s7 = smov 0   ;;  %s1258_s0 = inlined_call_operand.vmem [shape: f32[2,256,256], index: 0, kind: input, shape index: {}]   ;;  %s1259_s1 = inlined_call_operand.vmem [shape: f32[2,256,1], index: 1, kind: output, shape index: {}]  }
   0x1   :  { %s1093_s8 = smov 0  }
   0x2 LB: > { %s23_s9 = sadd.s32 1, %s1073_s7  ;;  %p894_p0 = scmp.ge.s32.totalorder %s1077_s8, 1  ;;  %s1077_s8 = sphi %s1093_s8, %s11_s8   ;;  %s1073_s7 = sphi %s1091_s7, %s1261_s7   ;;  %s1069_s6 = sphi %s1089_s6, %s1260_s6  }
   0x3   : > { %p25_p1 = scmp.ge.s32.totalorder %s23_s9, 2  ;;  %p109_p2 = scmp.lt.s32.totalorder %s1077_s8, 3 }
   0x5   : > { %s1263_s9 = smov (%p25_p1, %s23_s9), 0  ;;  %p110_p3 = pnand %p894_p0, %p109_p2 }
   0x6   : > { %p139_p4 = scmp.lt.s32.totalorder (!%p110_p3), %s1069_s6, 1  ;;  %vm767_vm0 = vcmask (!%p110_p3), 7168  }
   0x7   : > { %113 = sbr.rel (%p110_p3) target bundleno = 270 (0x10e), region = 24 }
   0xe   : > { %s1265_s6 = smov (!%p139_p4, %s1069_s6), 1 }
   0xf   : > { %s901_s10 = sshll.u32 %s1265_s6, 9  ;;  %s902_s14 = sshll.u32 %s1265_s6, 8 }
  0x10   : > { %s1113_s13 = scalar_lea.vmem %s1258_s0, %s901_s10  ;;  %s1183_s17 = scalar_lea.vmem %s1259_s1, %s902_s14 }
  0x11   : > { %v163_v0 = vld [vmem:[%s1113_s13 + $0x20] sm:$0xff]  ;;  %v164_v1 = vld [vmem:[%s1113_s13 + $0x28] sm:$0xff]  ;;  %v165_v6 = vld [vmem:[%s1113_s13 + $0x30] sm:$0xff] }
  0x12   : > { %v159_v2 = vld [vmem:[%s1113_s13] sm:$0xff]  ;;  %v227_v3 = vmax.f32 %v163_v0, 1e-06  ;;  %v228_v4 = vmax.f32 %v164_v1, 1e-06  ;;  %v160_v5 = vld [vmem:[%s1113_s13 + $0x8] sm:$0xff] }
  0x13   : > { %v223_v7 = vmax.f32 %v159_v2, 1e-06  ;;  %v224_v8 = vmax.f32 %v160_v5, 1e-06  ;;  %v166_v9 = vld [vmem:[%s1113_s13 + $0x38] sm:$0xff]  ;;  %v161_v10 = vld [vmem:[%s1113_s13 + $0x10] sm:$0xff] }
  0x14   : > { %v291_v11 = vmin.f32 %v227_v3, 10000.0  ;;  %v292_v12 = vmin.f32 %v228_v4, 10000.0  ;;  %v229_v13 = vmax.f32 %v165_v6, 1e-06  ;;  %v230_v14 = vmax.f32 %v166_v9, 1e-06 }
  0x15   : > { %v287_v15 = vmin.f32 %v223_v7, 10000.0  ;;  %v288_v16 = vmin.f32 %v224_v8, 10000.0  ;;  %v162_v17 = vld [vmem:[%s1113_s13 + $0x18] sm:$0xff]  ;;  %v225_v18 = vmax.f32 %v161_v10, 1e-06  ;;  %v169_v27 = vld [vmem:[%s1113_s13 + $0x50] sm:$0xff] }
  0x16   : > { %v355_v19 = vmul.f32 %v291_v11, %v291_v11  ;;  %v356_v20 = vmul.f32 %v292_v12, %v292_v12  ;;  %v293_v21 = vmin.f32 %v229_v13, 10000.0  ;;  %v294_v22 = vmin.f32 %v230_v14, 10000.0  ;;  %v170_v32 = vld [vmem:[%s1113_s13 + $0x58] sm:$0xff]  ;;  %v167_v37 = vld [vmem:[%s1113_s13 + $0x40] sm:$0xff]  ;;  %v168_v38 = vld [vmem:[%s1113_s13 + $0x48] sm:$0xff] }
  0x17   : > { %v351_v23 = vmul.f32 %v287_v15, %v287_v15  ;;  %v352_v24 = vmul.f32 %v288_v16, %v288_v16  ;;  %v226_v25 = vmax.f32 %v162_v17, 1e-06  ;;  %v289_v26 = vmin.f32 %v225_v18, 10000.0  ;;  %v173_v43 = vld [vmem:[%s1113_s13 + $0x70] sm:$0xff]  ;;  %v174_v44 = vld [vmem:[%s1113_s13 + $0x78] sm:$0xff]  ;;  %v171_v49 = vld [vmem:[%s1113_s13 + $0x60] sm:$0xff] }
  0x18   : > { %v419_v28 = vmul.f32 %v355_v19, %v291_v11  ;;  %v420_v29 = vmul.f32 %v356_v20, %v292_v12  ;;  %v357_v30 = vmul.f32 %v293_v21, %v293_v21  ;;  %v358_v31 = vmul.f32 %v294_v22, %v294_v22  ;;  %v172_v58 = vld [vmem:[%s1113_s13 + $0x68] sm:$0xff]  ;;  %v177_v3 = vld [vmem:[%s1113_s13 + $0x90] sm:$0xff]  ;;  %v178_v12 = vld [vmem:[%s1113_s13 + $0x98] sm:$0xff] }
  0x19   : > { %v415_v33 = vmul.f32 %v351_v23, %v287_v15  ;;  %v416_v34 = vmul.f32 %v352_v24, %v288_v16  ;;  %v290_v35 = vmin.f32 %v226_v25, 10000.0  ;;  %v353_v36 = vmul.f32 %v289_v26, %v289_v26  ;;  %v175_v17 = vld [vmem:[%s1113_s13 + $0x80] sm:$0xff]  ;;  %v176_v18 = vld [vmem:[%s1113_s13 + $0x88] sm:$0xff]  ;;  %v181_v23 = vld [vmem:[%s1113_s13 + $0xb0] sm:$0xff] }
  0x1a   : > { %v485_v39 = vadd.f32 %v420_v29, %v419_v28  ;;  %v421_v40 = vmul.f32 %v357_v30, %v293_v21  ;;  %v422_v41 = vmul.f32 %v358_v31, %v294_v22  ;;  %v233_v42 = vmax.f32 %v169_v27, 1e-06  ;;  %v182_v28 = vld [vmem:[%s1113_s13 + $0xb8] sm:$0xff]  ;;  %v179_v29 = vld [vmem:[%s1113_s13 + $0xa0] sm:$0xff] }
  0x1b   : > { %v479_v45 = vadd.f32 %v416_v34, %v415_v33  ;;  %v354_v46 = vmul.f32 %v290_v35, %v290_v35  ;;  %v417_v47 = vmul.f32 %v353_v36, %v289_v26  ;;  %v234_v48 = vmax.f32 %v170_v32, 1e-06 }
  0x1c   : > { %486 = vadd.xlane.f32.xlu1 %v485_v39  ;;  %v488_v50 = vadd.f32 %v422_v41, %v421_v40  ;;  %v297_v51 = vmin.f32 %v233_v42, 10000.0  ;;  %v231_v52 = vmax.f32 %v167_v37, 1e-06  ;;  %v232_v53 = vmax.f32 %v168_v38, 1e-06  ;;  %v180_v38 = vld [vmem:[%s1113_s13 + $0xa8] sm:$0xff] }
  0x1d   : > { %480 = vadd.xlane.f32.xlu0 %v479_v45  ;;  %v418_v54 = vmul.f32 %v354_v46, %v290_v35  ;;  %v298_v55 = vmin.f32 %v234_v48, 10000.0  ;;  %v237_v56 = vmax.f32 %v173_v43, 1e-06  ;;  %v238_v57 = vmax.f32 %v174_v44, 1e-06  ;;  %v185_v39 = vld [vmem:[%s1113_s13 + $0xd0] sm:$0xff] }
  0x1e   : > { %v361_v59 = vmul.f32 %v297_v51, %v297_v51  ;;  %v295_v60 = vmin.f32 %v231_v52, 10000.0  ;;  %v296_v61 = vmin.f32 %v232_v53, 10000.0  ;;  %v235_v62 = vmax.f32 %v171_v49, 1e-06  ;;  %v186_v52 = vld [vmem:[%s1113_s13 + $0xd8] sm:$0xff] }
  0x1f   : > { %v482_v63 = vadd.f32 %v418_v54, %v417_v47  ;;  %v362_v0 = vmul.f32 %v298_v55, %v298_v55  ;;  %v301_v1 = vmin.f32 %v237_v56, 10000.0  ;;  %v302_v2 = vmin.f32 %v238_v57, 10000.0 }
  0x20   : > { %489 = vadd.xlane.f32.xlu1 %v488_v50  ;;  %v425_v4 = vmul.f32 %v361_v59, %v297_v51  ;;  %v359_v5 = vmul.f32 %v295_v60, %v295_v60  ;;  %v360_v6 = vmul.f32 %v296_v61, %v296_v61  ;;  %v236_v7 = vmax.f32 %v172_v58, 1e-06 }
  0x21   : > { %483 = vadd.xlane.f32.xlu0 %v482_v63  ;;  %v426_v8 = vmul.f32 %v362_v0, %v298_v55  ;;  %v365_v9 = vmul.f32 %v301_v1, %v301_v1  ;;  %v366_v10 = vmul.f32 %v302_v2, %v302_v2  ;;  %v299_v11 = vmin.f32 %v235_v62, 10000.0  ;;  %v184_v62 = vld [vmem:[%s1113_s13 + $0xc8] sm:$0xff] }
  0x22   : > { %v423_v13 = vmul.f32 %v359_v5, %v295_v60  ;;  %v424_v14 = vmul.f32 %v360_v6, %v296_v61  ;;  %v300_v15 = vmin.f32 %v236_v7, 10000.0  ;;  %v241_v16 = vmax.f32 %v177_v3, 1e-06  ;;  %v183_v61 = vld [vmem:[%s1113_s13 + $0xc0] sm:$0xff]  ;;  %v189_v3 = vld [vmem:[%s1113_s13 + $0xf0] sm:$0xff] }
  0x23   : > { %v494_v19 = vadd.f32 %v426_v8, %v425_v4  ;;  %v429_v20 = vmul.f32 %v365_v9, %v301_v1  ;;  %v430_v21 = vmul.f32 %v366_v10, %v302_v2  ;;  %v363_v22 = vmul.f32 %v299_v11, %v299_v11  ;;  %v190_v8 = vld [vmem:[%s1113_s13 + $0xf8] sm:$0xff] }
  0x24   : > { %v491_v24 = vadd.f32 %v424_v14, %v423_v13  ;;  %v364_v25 = vmul.f32 %v300_v15, %v300_v15  ;;  %v242_v26 = vmax.f32 %v178_v12, 1e-06  ;;  %v305_v27 = vmin.f32 %v241_v16, 10000.0  ;;  %v187_v13 = vld [vmem:[%s1113_s13 + $0xe0] sm:$0xff] }
  0x25   : > { %495 = vadd.xlane.f32.xlu1 %v494_v19  ;;  %v500_v30 = vadd.f32 %v430_v21, %v429_v20  ;;  %v427_v31 = vmul.f32 %v363_v22, %v299_v11  ;;  %v239_v32 = vmax.f32 %v175_v17, 1e-06  ;;  %v240_v33 = vmax.f32 %v176_v18, 1e-06  ;;  %v188_v22 = vld [vmem:[%s1113_s13 + $0xe8] sm:$0xff] }
  0x26   : > { %492 = vadd.xlane.f32.xlu0 %v491_v24  ;;  %v428_v34 = vmul.f32 %v364_v25, %v300_v15  ;;  %v306_v35 = vmin.f32 %v242_v26, 10000.0  ;;  %v369_v36 = vmul.f32 %v305_v27, %v305_v27  ;;  %v245_v37 = vmax.f32 %v181_v23, 1e-06  ;;  %v193_v23 = vld [vmem:[%s1113_s13 + $0x110] sm:$0xff] }
  0x27   : > { %v303_v40 = vmin.f32 %v239_v32, 10000.0  ;;  %v304_v41 = vmin.f32 %v240_v33, 10000.0  ;;  %v246_v42 = vmax.f32 %v182_v28, 1e-06  ;;  %v243_v43 = vmax.f32 %v179_v29, 1e-06 }
  0x28   : > { %v497_v44 = vadd.f32 %v428_v34, %v427_v31  ;;  %v370_v45 = vmul.f32 %v306_v35, %v306_v35  ;;  %v433_v46 = vmul.f32 %v369_v36, %v305_v27  ;;  %v309_v47 = vmin.f32 %v245_v37, 10000.0  ;;  %v194_v32 = vld [vmem:[%s1113_s13 + $0x118] sm:$0xff]  ;;  %v191_v37 = vld [vmem:[%s1113_s13 + $0x100] sm:$0xff] }
  0x29   : > { %501 = vadd.xlane.f32.xlu1 %v500_v30  ;;  %v367_v48 = vmul.f32 %v303_v40, %v303_v40  ;;  %v368_v49 = vmul.f32 %v304_v41, %v304_v41  ;;  %v310_v50 = vmin.f32 %v246_v42, 10000.0  ;;  %v244_v51 = vmax.f32 %v180_v38, 1e-06  ;;  %v192_v42 = vld [vmem:[%s1113_s13 + $0x108] sm:$0xff] }
  0x2a   : > { %498 = vadd.xlane.f32.xlu0 %v497_v44  ;;  %v434_v53 = vmul.f32 %v370_v45, %v306_v35  ;;  %v373_v54 = vmul.f32 %v309_v47, %v309_v47  ;;  %v307_v55 = vmin.f32 %v243_v43, 10000.0  ;;  %v249_v56 = vmax.f32 %v185_v39, 1e-06 }
  0x2b   : > { %v431_v57 = vmul.f32 %v367_v48, %v303_v40  ;;  %v432_v58 = vmul.f32 %v368_v49, %v304_v41  ;;  %v374_v59 = vmul.f32 %v310_v50, %v310_v50  ;;  %v308_v60 = vmin.f32 %v244_v51, 10000.0 }
  0x2c   : > { %v506_v63 = vadd.f32 %v434_v53, %v433_v46  ;;  %v437_v0 = vmul.f32 %v373_v54, %v309_v47  ;;  %v371_v1 = vmul.f32 %v307_v55, %v307_v55  ;;  %v250_v2 = vmax.f32 %v186_v52, 1e-06  ;;  %v197_v47 = vld [vmem:[%s1113_s13 + $0x130] sm:$0xff]  ;;  %v198_v52 = vld [vmem:[%s1113_s13 + $0x138] sm:$0xff] }
  0x2d   : > { %v503_v4 = vadd.f32 %v432_v58, %v431_v57  ;;  %v438_v5 = vmul.f32 %v374_v59, %v310_v50  ;;  %v372_v6 = vmul.f32 %v308_v60, %v308_v60  ;;  %v313_v7 = vmin.f32 %v249_v56, 10000.0  ;;  %v195_v57 = vld [vmem:[%s1113_s13 + $0x120] sm:$0xff] }
  0x2e   : > { %507 = vadd.xlane.f32.xlu1 %v506_v63  ;;  %v435_v9 = vmul.f32 %v371_v1, %v307_v55  ;;  %v314_v10 = vmin.f32 %v250_v2, 10000.0  ;;  %v247_v11 = vmax.f32 %v183_v61, 1e-06  ;;  %v248_v12 = vmax.f32 %v184_v62, 1e-06  ;;  %v196_v2 = vld [vmem:[%s1113_s13 + $0x128] sm:$0xff] }
  0x2f   : > { %504 = vadd.xlane.f32.xlu0 %v503_v4  ;;  %v512_v14 = vadd.f32 %v438_v5, %v437_v0  ;;  %v436_v15 = vmul.f32 %v372_v6, %v308_v60  ;;  %v377_v16 = vmul.f32 %v313_v7, %v313_v7  ;;  %v253_v17 = vmax.f32 %v189_v3, 1e-06 }
  0x30   : > { %v378_v18 = vmul.f32 %v314_v10, %v314_v10  ;;  %v311_v19 = vmin.f32 %v247_v11, 10000.0  ;;  %v312_v20 = vmin.f32 %v248_v12, 10000.0  ;;  %v254_v21 = vmax.f32 %v190_v8, 1e-06  ;;  %v202_v12 = vld [vmem:[%s1113_s13 + $0x158] sm:$0xff] }
  0x31   : > { %v509_v24 = vadd.f32 %v436_v15, %v435_v9  ;;  %v441_v25 = vmul.f32 %v377_v16, %v313_v7  ;;  %v317_v26 = vmin.f32 %v253_v17, 10000.0  ;;  %v251_v27 = vmax.f32 %v187_v13, 1e-06  ;;  %v201_v7 = vld [vmem:[%s1113_s13 + $0x150] sm:$0xff]  ;;  %v199_v17 = vld [vmem:[%s1113_s13 + $0x140] sm:$0xff] }
  0x32   : > { %513 = vadd.xlane.f32.xlu1 %v512_v14  ;;  %v442_v28 = vmul.f32 %v378_v18, %v314_v10  ;;  %v375_v29 = vmul.f32 %v311_v19, %v311_v19  ;;  %v376_v30 = vmul.f32 %v312_v20, %v312_v20  ;;  %v318_v31 = vmin.f32 %v254_v21, 10000.0 }
  0x33   : > { %510 = vadd.xlane.f32.xlu0 %v509_v24  ;;  %v381_v33 = vmul.f32 %v317_v26, %v317_v26  ;;  %v252_v34 = vmax.f32 %v188_v22, 1e-06  ;;  %v315_v35 = vmin.f32 %v251_v27, 10000.0  ;;  %v257_v36 = vmax.f32 %v193_v23, 1e-06  ;;  %v200_v22 = vld [vmem:[%s1113_s13 + $0x148] sm:$0xff] }
  0x34   : > { %v518_v38 = vadd.f32 %v442_v28, %v441_v25  ;;  %v439_v39 = vmul.f32 %v375_v29, %v311_v19  ;;  %v440_v40 = vmul.f32 %v376_v30, %v312_v20  ;;  %v382_v41 = vmul.f32 %v318_v31, %v318_v31  ;;  %v205_v27 = vld [vmem:[%s1113_s13 + $0x170] sm:$0xff] }
  0x35   : > { %v445_v43 = vmul.f32 %v381_v33, %v317_v26  ;;  %v316_v44 = vmin.f32 %v252_v34, 10000.0  ;;  %v379_v45 = vmul.f32 %v315_v35, %v315_v35  ;;  %v258_v46 = vmax.f32 %v194_v32, 1e-06  ;;  %v206_v32 = vld [vmem:[%s1113_s13 + $0x178] sm:$0xff] }
  0x36   : > { %519 = vadd.xlane.f32.xlu1 %v518_v38  ;;  %v515_v48 = vadd.f32 %v440_v40, %v439_v39  ;;  %v446_v49 = vmul.f32 %v382_v41, %v318_v31  ;;  %v321_v50 = vmin.f32 %v257_v36, 10000.0  ;;  %v255_v51 = vmax.f32 %v191_v37, 1e-06  ;;  %v203_v37 = vld [vmem:[%s1113_s13 + $0x160] sm:$0xff] }
  0x37   : > { %v380_v53 = vmul.f32 %v316_v44, %v316_v44  ;;  %v443_v54 = vmul.f32 %v379_v45, %v315_v35  ;;  %v322_v55 = vmin.f32 %v258_v46, 10000.0  ;;  %v256_v56 = vmax.f32 %v192_v42, 1e-06  ;;  %v204_v46 = vld [vmem:[%s1113_s13 + $0x168] sm:$0xff] }
  0x38   : > { %516 = vadd.xlane.f32.xlu0 %v515_v48  ;;  %v524_v58 = vadd.f32 %v446_v49, %v445_v43  ;;  %v385_v59 = vmul.f32 %v321_v50, %v321_v50  ;;  %v319_v60 = vmin.f32 %v255_v51, 10000.0  ;;  %v261_v61 = vmax.f32 %v197_v47, 1e-06  ;;  %v209_v51 = vld [vmem:[%s1113_s13 + $0x190] sm:$0xff] }
  0x39   : > { %v444_v62 = vmul.f32 %v380_v53, %v316_v44  ;;  %v386_v63 = vmul.f32 %v322_v55, %v322_v55  ;;  %v320_v0 = vmin.f32 %v256_v56, 10000.0  ;;  %v262_v1 = vmax.f32 %v198_v52, 1e-06  ;;  %v210_v56 = vld [vmem:[%s1113_s13 + $0x198] sm:$0xff] }
  0x3a   : > { %525 = vadd.xlane.f32.xlu1 %v524_v58  ;;  %v449_v3 = vmul.f32 %v385_v59, %v321_v50  ;;  %v383_v4 = vmul.f32 %v319_v60, %v319_v60  ;;  %v325_v5 = vmin.f32 %v261_v61, 10000.0  ;;  %v259_v6 = vmax.f32 %v195_v57, 1e-06  ;;  %v207_v61 = vld [vmem:[%s1113_s13 + $0x180] sm:$0xff] }
  0x3b   : > { %v521_v8 = vadd.f32 %v444_v62, %v443_v54  ;;  %v450_v9 = vmul.f32 %v386_v63, %v322_v55  ;;  %v384_v10 = vmul.f32 %v320_v0, %v320_v0  ;;  %v326_v11 = vmin.f32 %v262_v1, 10000.0 }
  0x3c   : > { %v447_v13 = vmul.f32 %v383_v4, %v319_v60  ;;  %v389_v14 = vmul.f32 %v325_v5, %v325_v5  ;;  %v260_v15 = vmax.f32 %v196_v2, 1e-06  ;;  %v323_v16 = vmin.f32 %v259_v6, 10000.0  ;;  %v208_v2 = vld [vmem:[%s1113_s13 + $0x188] sm:$0xff] }
  0x3d   : > { %522 = vadd.xlane.f32.xlu0 %v521_v8  ;;  %v530_v18 = vadd.f32 %v450_v9, %v449_v3  ;;  %v448_v19 = vmul.f32 %v384_v10, %v320_v0  ;;  %v390_v20 = vmul.f32 %v326_v11, %v326_v11  ;;  %v265_v21 = vmax.f32 %v201_v7, 1e-06  ;;  %v213_v7 = vld [vmem:[%s1113_s13 + $0x1b0] sm:$0xff] }
  0x3e   : > { %v453_v23 = vmul.f32 %v389_v14, %v325_v5  ;;  %v324_v24 = vmin.f32 %v260_v15, 10000.0  ;;  %v387_v25 = vmul.f32 %v323_v16, %v323_v16  ;;  %v266_v26 = vmax.f32 %v202_v12, 1e-06  ;;  %v214_v12 = vld [vmem:[%s1113_s13 + $0x1b8] sm:$0xff] }
  0x3f   : > { %531 = vadd.xlane.f32.xlu1 %v530_v18  ;;  %v527_v28 = vadd.f32 %v448_v19, %v447_v13  ;;  %v454_v29 = vmul.f32 %v390_v20, %v326_v11  ;;  %v329_v30 = vmin.f32 %v265_v21, 10000.0  ;;  %v263_v31 = vmax.f32 %v199_v17, 1e-06  ;;  %v211_v17 = vld [vmem:[%s1113_s13 + $0x1a0] sm:$0xff] }
  0x40   : > { %v388_v33 = vmul.f32 %v324_v24, %v324_v24  ;;  %v451_v34 = vmul.f32 %v387_v25, %v323_v16  ;;  %v330_v35 = vmin.f32 %v266_v26, 10000.0  ;;  %v264_v36 = vmax.f32 %v200_v22, 1e-06  ;;  %v212_v26 = vld [vmem:[%s1113_s13 + $0x1a8] sm:$0xff] }
  0x41   : > { %528 = vadd.xlane.f32.xlu0 %v527_v28  ;;  %v536_v38 = vadd.f32 %v454_v29, %v453_v23  ;;  %v393_v39 = vmul.f32 %v329_v30, %v329_v30  ;;  %v327_v40 = vmin.f32 %v263_v31, 10000.0  ;;  %v269_v41 = vmax.f32 %v205_v27, 1e-06  ;;  %v217_v31 = vld [vmem:[%s1113_s13 + $0x1d0] sm:$0xff] }
  0x42   : > { %v452_v42 = vmul.f32 %v388_v33, %v324_v24  ;;  %v394_v43 = vmul.f32 %v330_v35, %v330_v35  ;;  %v328_v44 = vmin.f32 %v264_v36, 10000.0  ;;  %v270_v45 = vmax.f32 %v206_v32, 1e-06  ;;  %v218_v36 = vld [vmem:[%s1113_s13 + $0x1d8] sm:$0xff] }
  0x43   : > { %537 = vadd.xlane.f32.xlu1 %v536_v38  ;;  %v457_v47 = vmul.f32 %v393_v39, %v329_v30  ;;  %v391_v48 = vmul.f32 %v327_v40, %v327_v40  ;;  %v333_v49 = vmin.f32 %v269_v41, 10000.0  ;;  %v267_v50 = vmax.f32 %v203_v37, 1e-06  ;;  %v215_v41 = vld [vmem:[%s1113_s13 + $0x1c0] sm:$0xff] }
  0x44   : > { %v533_v52 = vadd.f32 %v452_v42, %v451_v34  ;;  %v458_v53 = vmul.f32 %v394_v43, %v330_v35  ;;  %v392_v54 = vmul.f32 %v328_v44, %v328_v44  ;;  %v334_v55 = vmin.f32 %v270_v45, 10000.0 }
  0x45   : > { %v455_v57 = vmul.f32 %v391_v48, %v327_v40  ;;  %v397_v58 = vmul.f32 %v333_v49, %v333_v49  ;;  %v268_v59 = vmax.f32 %v204_v46, 1e-06  ;;  %v331_v60 = vmin.f32 %v267_v50, 10000.0  ;;  %v216_v46 = vld [vmem:[%s1113_s13 + $0x1c8] sm:$0xff] }
  0x46   : > { %534 = vadd.xlane.f32.xlu0 %v533_v52  ;;  %v542_v62 = vadd.f32 %v458_v53, %v457_v47  ;;  %v456_v63 = vmul.f32 %v392_v54, %v328_v44  ;;  %v398_v0 = vmul.f32 %v334_v55, %v334_v55  ;;  %v273_v1 = vmax.f32 %v209_v51, 1e-06  ;;  %v221_v51 = vld [vmem:[%s1113_s13 + $0x1f0] sm:$0xff] }
  0x47   : > { %v461_v3 = vmul.f32 %v397_v58, %v333_v49  ;;  %v332_v4 = vmin.f32 %v268_v59, 10000.0  ;;  %v395_v5 = vmul.f32 %v331_v60, %v331_v60  ;;  %v274_v6 = vmax.f32 %v210_v56, 1e-06  ;;  %v222_v56 = vld [vmem:[%s1113_s13 + $0x1f8] sm:$0xff] }
  0x48   : > { %543 = vadd.xlane.f32.xlu1 %v542_v62  ;;  %v539_v8 = vadd.f32 %v456_v63, %v455_v57  ;;  %v462_v9 = vmul.f32 %v398_v0, %v334_v55  ;;  %v337_v10 = vmin.f32 %v273_v1, 10000.0  ;;  %v271_v11 = vmax.f32 %v207_v61, 1e-06  ;;  %v219_v61 = vld [vmem:[%s1113_s13 + $0x1e0] sm:$0xff] }
  0x49   : > { %v396_v13 = vmul.f32 %v332_v4, %v332_v4  ;;  %v459_v14 = vmul.f32 %v395_v5, %v331_v60  ;;  %v338_v15 = vmin.f32 %v274_v6, 10000.0  ;;  %v272_v16 = vmax.f32 %v208_v2, 1e-06  ;;  %v220_v6 = vld [vmem:[%s1113_s13 + $0x1e8] sm:$0xff] }
  0x4a   : > { %540 = vadd.xlane.f32.xlu0 %v539_v8  ;;  %v548_v18 = vadd.f32 %v462_v9, %v461_v3  ;;  %v401_v19 = vmul.f32 %v337_v10, %v337_v10  ;;  %v335_v20 = vmin.f32 %v271_v11, 10000.0  ;;  %v277_v21 = vmax.f32 %v213_v7, 1e-06 }
  0x4b   : > { %v460_v22 = vmul.f32 %v396_v13, %v332_v4  ;;  %v402_v23 = vmul.f32 %v338_v15, %v338_v15  ;;  %v336_v24 = vmin.f32 %v272_v16, 10000.0  ;;  %v278_v25 = vmax.f32 %v214_v12, 1e-06 }
  0x4c   : > { %549 = vadd.xlane.f32.xlu1 %v548_v18  ;;  %v465_v27 = vmul.f32 %v401_v19, %v337_v10  ;;  %v399_v28 = vmul.f32 %v335_v20, %v335_v20  ;;  %v341_v29 = vmin.f32 %v277_v21, 10000.0  ;;  %v275_v30 = vmax.f32 %v211_v17, 1e-06 }
  0x4d   : > { %v545_v32 = vadd.f32 %v460_v22, %v459_v14  ;;  %v466_v33 = vmul.f32 %v402_v23, %v338_v15  ;;  %v400_v34 = vmul.f32 %v336_v24, %v336_v24  ;;  %v342_v35 = vmin.f32 %v278_v25, 10000.0 }
  0x4e   : > { %v463_v37 = vmul.f32 %v399_v28, %v335_v20  ;;  %v405_v38 = vmul.f32 %v341_v29, %v341_v29  ;;  %v276_v39 = vmax.f32 %v212_v26, 1e-06  ;;  %v339_v40 = vmin.f32 %v275_v30, 10000.0 }
  0x4f   : > { %546 = vadd.xlane.f32.xlu0 %v545_v32  ;;  %v554_v42 = vadd.f32 %v466_v33, %v465_v27  ;;  %v464_v43 = vmul.f32 %v400_v34, %v336_v24  ;;  %v406_v44 = vmul.f32 %v342_v35, %v342_v35  ;;  %v281_v45 = vmax.f32 %v217_v31, 1e-06 }
  0x50   : > { %v469_v47 = vmul.f32 %v405_v38, %v341_v29  ;;  %v340_v48 = vmin.f32 %v276_v39, 10000.0  ;;  %v403_v49 = vmul.f32 %v339_v40, %v339_v40  ;;  %v282_v50 = vmax.f32 %v218_v36, 1e-06 }
  0x51   : > { %555 = vadd.xlane.f32.xlu1 %v554_v42  ;;  %v551_v52 = vadd.f32 %v464_v43, %v463_v37  ;;  %v470_v53 = vmul.f32 %v406_v44, %v342_v35  ;;  %v345_v54 = vmin.f32 %v281_v45, 10000.0  ;;  %v279_v55 = vmax.f32 %v215_v41, 1e-06 }
  0x52   : > { %v404_v57 = vmul.f32 %v340_v48, %v340_v48  ;;  %v467_v58 = vmul.f32 %v403_v49, %v339_v40  ;;  %v346_v59 = vmin.f32 %v282_v50, 10000.0  ;;  %v280_v60 = vmax.f32 %v216_v46, 1e-06 }
  0x53   : > { %552 = vadd.xlane.f32.xlu0 %v551_v52  ;;  %v560_v62 = vadd.f32 %v470_v53, %v469_v47  ;;  %v409_v63 = vmul.f32 %v345_v54, %v345_v54  ;;  %v343_v0 = vmin.f32 %v279_v55, 10000.0  ;;  %v285_v1 = vmax.f32 %v221_v51, 1e-06 }
  0x54   : > { %v468_v2 = vmul.f32 %v404_v57, %v340_v48  ;;  %v410_v3 = vmul.f32 %v346_v59, %v346_v59  ;;  %v344_v4 = vmin.f32 %v280_v60, 10000.0  ;;  %v286_v5 = vmax.f32 %v222_v56, 1e-06 }
  0x55   : > { %561 = vadd.xlane.f32.xlu1 %v560_v62  ;;  %v473_v7 = vmul.f32 %v409_v63, %v345_v54  ;;  %v407_v8 = vmul.f32 %v343_v0, %v343_v0  ;;  %v349_v9 = vmin.f32 %v285_v1, 10000.0  ;;  %v283_v10 = vmax.f32 %v219_v61, 1e-06 }
  0x56   : > { %v557_v11 = vadd.f32 %v468_v2, %v467_v58  ;;  %v474_v12 = vmul.f32 %v410_v3, %v346_v59  ;;  %v408_v13 = vmul.f32 %v344_v4, %v344_v4  ;;  %v350_v14 = vmin.f32 %v286_v5, 10000.0 }
  0x57   : > { %v471_v15 = vmul.f32 %v407_v8, %v343_v0  ;;  %v413_v16 = vmul.f32 %v349_v9, %v349_v9  ;;  %v284_v17 = vmax.f32 %v220_v6, 1e-06  ;;  %v347_v18 = vmin.f32 %v283_v10, 10000.0 }
  0x58   : > { %558 = vadd.xlane.f32.xlu0 %v557_v11  ;;  %v566_v19 = vadd.f32 %v474_v12, %v473_v7  ;;  %v472_v20 = vmul.f32 %v408_v13, %v344_v4  ;;  %v414_v21 = vmul.f32 %v350_v14, %v350_v14 }
  0x59   : > { %v477_v22 = vmul.f32 %v413_v16, %v349_v9  ;;  %v348_v23 = vmin.f32 %v284_v17, 10000.0  ;;  %v411_v24 = vmul.f32 %v347_v18, %v347_v18 }
  0x5a   : > { %567 = vadd.xlane.f32.xlu1 %v566_v19  ;;  %v563_v25 = vadd.f32 %v472_v20, %v471_v15  ;;  %v478_v26 = vmul.f32 %v414_v21, %v350_v14 }
  0x5b   : > { %v412_v27 = vmul.f32 %v348_v23, %v348_v23  ;;  %v475_v28 = vmul.f32 %v411_v24, %v347_v18 }
  0x5c   : > { %564 = vadd.xlane.f32.xlu0 %v563_v25  ;;  %v572_v29 = vadd.f32 %v478_v26, %v477_v22 }
  0x5d   : > { %v476_v30 = vmul.f32 %v412_v27, %v348_v23 }
  0x5e   : > { %573 = vadd.xlane.f32.xlu1 %v572_v29 }
  0x5f   : > { %v569_v31 = vadd.f32 %v476_v30, %v475_v28 }
  0x61   : > { %570 = vadd.xlane.f32.xlu0 %v569_v31 }
  0xa9   : > { %v487_v32 = vpop.xlane.xlu1 %486 }
  0xaa   : > { %v577_v33 = vmul.f32 0.00390625, %v487_v32  ;;  %v481_v34 = vpop.xlane.xlu0 %480 }
  0xab   : > { %v575_v35 = vmul.f32 0.00390625, %v481_v34 }
  0xac   : > { %927 = vlog2.f32 %v577_v33 }
  0xad   : > { %929 = vlog2.f32 %v575_v35  ;;  %v490_v36 = vpop.xlane.xlu1 %489 }
  0xae   : > { %v578_v37 = vmul.f32 0.00390625, %v490_v36  ;;  %v484_v38 = vpop.xlane.xlu0 %483 }
  0xaf   : > { %v576_v39 = vmul.f32 0.00390625, %v484_v38 }
  0xb0   : > { %931 = vlog2.f32 %v578_v37 }
  0xb1   : > { %933 = vlog2.f32 %v576_v39 }
  0xb2   : > { %v496_v40 = vpop.xlane.xlu1 %495 }
  0xb3   : > { %v580_v41 = vmul.f32 0.00390625, %v496_v40  ;;  %v493_v42 = vpop.xlane.xlu0 %492 }
  0xb4   : > { %v579_v43 = vmul.f32 0.00390625, %v493_v42 }
  0xb5   : > { %935 = vlog2.f32 %v580_v41 }
  0xb6   : > { %v928_v44 = vpop.eup %927  ;;  %937 = vlog2.f32 %v579_v43  ;;  %v502_v45 = vpop.xlane.xlu1 %501 }
  0xb7   : > { %v930_v46 = vpop.eup %929  ;;  %v612_v47 = vmul.f32 0.6931472, %v928_v44  ;;  %v582_v48 = vmul.f32 0.00390625, %v502_v45  ;;  %v499_v49 = vpop.xlane.xlu0 %498 }
  0xb8   : > { %v608_v50 = vmul.f32 0.6931472, %v930_v46  ;;  %v581_v51 = vmul.f32 0.00390625, %v499_v49 }
  0xb9   : > { %v673_v52 = vmul.f32 0.33333334, %v612_v47  ;;  %939 = vlog2.f32 %v582_v48 }
  0xba   : > { %v932_v53 = vpop.eup %931  ;;  %v671_v54 = vmul.f32 0.33333334, %v608_v50  ;;  %941 = vlog2.f32 %v581_v51 }
  0xbb   : > { %v934_v55 = vpop.eup %933  ;;  %v707_v56 = vmul.f32 1.442695, %v673_v52  ;;  %v614_v57 = vmul.f32 0.6931472, %v932_v53  ;;  %v508_v58 = vpop.xlane.xlu1 %507 }
  0xbc   : > { %v703_v59 = vmul.f32 1.442695, %v671_v54  ;;  %v610_v60 = vmul.f32 0.6931472, %v934_v55  ;;  %v584_v61 = vmul.f32 0.00390625, %v508_v58  ;;  %v505_v62 = vpop.xlane.xlu0 %504 }
  0xbd   : > { %943 = vpow2.f32 %v707_v56  ;;  %v674_v63 = vmul.f32 0.33333334, %v614_v57  ;;  %v583_v0 = vmul.f32 0.00390625, %v505_v62 }
  0xbe   : > { %945 = vpow2.f32 %v703_v59  ;;  %v672_v1 = vmul.f32 0.33333334, %v610_v60 }
  0xbf   : > { %v936_v2 = vpop.eup %935  ;;  %v709_v3 = vmul.f32 1.442695, %v674_v63  ;;  %947 = vlog2.f32 %v584_v61  ;;  %v514_v4 = vpop.xlane.xlu1 %513 }
  0xc0   : > { %v938_v5 = vpop.eup %937  ;;  %v705_v6 = vmul.f32 1.442695, %v672_v1  ;;  %v618_v7 = vmul.f32 0.6931472, %v936_v2  ;;  %949 = vlog2.f32 %v583_v0  ;;  %v586_v8 = vmul.f32 0.00390625, %v514_v4  ;;  %v511_v9 = vpop.xlane.xlu0 %510 }
  0xc1   : > { %951 = vpow2.f32 %v709_v3  ;;  %v616_v10 = vmul.f32 0.6931472, %v938_v5  ;;  %v585_v11 = vmul.f32 0.00390625, %v511_v9 }
  0xc2   : > { %953 = vpow2.f32 %v705_v6  ;;  %v676_v12 = vmul.f32 0.33333334, %v618_v7 }
  0xc3   : > { %v940_v13 = vpop.eup %939  ;;  %v675_v14 = vmul.f32 0.33333334, %v616_v10  ;;  %955 = vlog2.f32 %v586_v8  ;;  %v520_v15 = vpop.xlane.xlu1 %519 }
  0xc4   : > { %v942_v16 = vpop.eup %941  ;;  %v713_v17 = vmul.f32 1.442695, %v676_v12  ;;  %v622_v18 = vmul.f32 0.6931472, %v940_v13  ;;  %957 = vlog2.f32 %v585_v11  ;;  %v588_v19 = vmul.f32 0.00390625, %v520_v15 }
  0xc5   : > { %v711_v20 = vmul.f32 1.442695, %v675_v14  ;;  %v620_v21 = vmul.f32 0.6931472, %v942_v16  ;;  %v517_v22 = vpop.xlane.xlu0 %516 }
  0xc6   : > { %959 = vpow2.f32 %v713_v17  ;;  %v678_v23 = vmul.f32 0.33333334, %v622_v18  ;;  %v587_v24 = vmul.f32 0.00390625, %v517_v22 }
  0xc7   : > { %v944_v25 = vpop.eup %943  ;;  %961 = vpow2.f32 %v711_v20  ;;  %v677_v26 = vmul.f32 0.33333334, %v620_v21  ;;  %v526_v27 = vpop.xlane.xlu1 %525 }
  0xc8   : > { %v946_v28 = vpop.eup %945  ;;  %770 = vst.msk [vmem:[%s1183_s17 + $0x10] sm:$0xff] %vm767_vm0, %v944_v25  ;;  %v717_v29 = vmul.f32 1.442695, %v678_v23  ;;  %963 = vlog2.f32 %v588_v19  ;;  %v590_v30 = vmul.f32 0.00390625, %v526_v27 }
  0xc9   : > { %v948_v31 = vpop.eup %947  ;;  %768 = vst.msk [vmem:[%s1183_s17] sm:$0xff] %vm767_vm0, %v946_v28  ;;  %v715_v32 = vmul.f32 1.442695, %v677_v26  ;;  %965 = vlog2.f32 %v587_v24 }
  0xca   : > { %v950_v33 = vpop.eup %949  ;;  %967 = vpow2.f32 %v717_v29  ;;  %v626_v34 = vmul.f32 0.6931472, %v948_v31  ;;  %v523_v35 = vpop.xlane.xlu0 %522 }
  0xcb   : > { %v952_v36 = vpop.eup %951  ;;  %969 = vpow2.f32 %v715_v32  ;;  %v624_v37 = vmul.f32 0.6931472, %v950_v33  ;;  %v589_v38 = vmul.f32 0.00390625, %v523_v35 }
  0xcc   : > { %v954_v39 = vpop.eup %953  ;;  %771 = vst.msk [vmem:[%s1183_s17 + $0x18] sm:$0xff] %vm767_vm0, %v952_v36  ;;  %v680_v40 = vmul.f32 0.33333334, %v626_v34  ;;  %971 = vlog2.f32 %v590_v30  ;;  %v532_v41 = vpop.xlane.xlu1 %531 }
  0xcd   : > { %v956_v42 = vpop.eup %955  ;;  %769 = vst.msk [vmem:[%s1183_s17 + $0x8] sm:$0xff] %vm767_vm0, %v954_v39  ;;  %v679_v43 = vmul.f32 0.33333334, %v624_v37  ;;  %973 = vlog2.f32 %v589_v38  ;;  %v592_v44 = vmul.f32 0.00390625, %v532_v41 }
  0xce   : > { %v958_v45 = vpop.eup %957  ;;  %v721_v46 = vmul.f32 1.442695, %v680_v40  ;;  %v630_v47 = vmul.f32 0.6931472, %v956_v42  ;;  %v529_v48 = vpop.xlane.xlu0 %528 }
  0xcf   : > { %v719_v49 = vmul.f32 1.442695, %v679_v43  ;;  %v628_v50 = vmul.f32 0.6931472, %v958_v45  ;;  %975 = vlog2.f32 %v592_v44  ;;  %v591_v51 = vmul.f32 0.00390625, %v529_v48 }
  0xd0   : > { %v960_v52 = vpop.eup %959  ;;  %977 = vpow2.f32 %v721_v46  ;;  %v682_v53 = vmul.f32 0.33333334, %v630_v47  ;;  %v538_v54 = vpop.xlane.xlu1 %537 }
  0xd1   : > { %v962_v55 = vpop.eup %961  ;;  %773 = vst.msk [vmem:[%s1183_s17 + $0x28] sm:$0xff] %vm767_vm0, %v960_v52  ;;  %979 = vpow2.f32 %v719_v49  ;;  %v681_v56 = vmul.f32 0.33333334, %v628_v50  ;;  %v594_v57 = vmul.f32 0.00390625, %v538_v54 }
  0xd2   : > { %v964_v58 = vpop.eup %963  ;;  %772 = vst.msk [vmem:[%s1183_s17 + $0x20] sm:$0xff] %vm767_vm0, %v962_v55  ;;  %v725_v59 = vmul.f32 1.442695, %v682_v53  ;;  %981 = vlog2.f32 %v591_v51 }
  0xd3   : > { %v966_v60 = vpop.eup %965  ;;  %v723_v61 = vmul.f32 1.442695, %v681_v56  ;;  %v634_v62 = vmul.f32 0.6931472, %v964_v58  ;;  %983 = vlog2.f32 %v594_v57  ;;  %v535_v63 = vpop.xlane.xlu0 %534 }
  0xd4   : > { %v968_v0 = vpop.eup %967  ;;  %985 = vpow2.f32 %v725_v59  ;;  %v632_v1 = vmul.f32 0.6931472, %v966_v60  ;;  %v593_v2 = vmul.f32 0.00390625, %v535_v63 }
  0xd5   : > { %v970_v3 = vpop.eup %969  ;;  %775 = vst.msk [vmem:[%s1183_s17 + $0x38] sm:$0xff] %vm767_vm0, %v968_v0  ;;  %987 = vpow2.f32 %v723_v61  ;;  %v684_v4 = vmul.f32 0.33333334, %v634_v62  ;;  %v544_v5 = vpop.xlane.xlu1 %543 }
  0xd6   : > { %v972_v6 = vpop.eup %971  ;;  %774 = vst.msk [vmem:[%s1183_s17 + $0x30] sm:$0xff] %vm767_vm0, %v970_v3  ;;  %v683_v7 = vmul.f32 0.33333334, %v632_v1  ;;  %989 = vlog2.f32 %v593_v2  ;;  %v596_v8 = vmul.f32 0.00390625, %v544_v5 }
  0xd7   : > { %v974_v9 = vpop.eup %973  ;;  %v729_v10 = vmul.f32 1.442695, %v684_v4  ;;  %v638_v11 = vmul.f32 0.6931472, %v972_v6  ;;  %v541_v12 = vpop.xlane.xlu0 %540 }
  0xd8   : > { %v727_v13 = vmul.f32 1.442695, %v683_v7  ;;  %v636_v14 = vmul.f32 0.6931472, %v974_v9  ;;  %991 = vlog2.f32 %v596_v8  ;;  %v595_v15 = vmul.f32 0.00390625, %v541_v12 }
  0xd9   : > { %v976_v16 = vpop.eup %975  ;;  %993 = vpow2.f32 %v729_v10  ;;  %v686_v17 = vmul.f32 0.33333334, %v638_v11  ;;  %v550_v18 = vpop.xlane.xlu1 %549 }
  0xda   : > { %v978_v19 = vpop.eup %977  ;;  %995 = vpow2.f32 %v727_v13  ;;  %v685_v20 = vmul.f32 0.33333334, %v636_v14  ;;  %v642_v21 = vmul.f32 0.6931472, %v976_v16  ;;  %v598_v22 = vmul.f32 0.00390625, %v550_v18 }
  0xdb   : > { %v980_v23 = vpop.eup %979  ;;  %777 = vst.msk [vmem:[%s1183_s17 + $0x48] sm:$0xff] %vm767_vm0, %v978_v19  ;;  %v733_v24 = vmul.f32 1.442695, %v686_v17  ;;  %997 = vlog2.f32 %v595_v15 }
  0xdc   : > { %v982_v25 = vpop.eup %981  ;;  %776 = vst.msk [vmem:[%s1183_s17 + $0x40] sm:$0xff] %vm767_vm0, %v980_v23  ;;  %v731_v26 = vmul.f32 1.442695, %v685_v20  ;;  %v688_v27 = vmul.f32 0.33333334, %v642_v21  ;;  %999 = vlog2.f32 %v598_v22  ;;  %v547_v28 = vpop.xlane.xlu0 %546 }
  0xdd   : > { %v984_v29 = vpop.eup %983  ;;  %1001 = vpow2.f32 %v733_v24  ;;  %v640_v30 = vmul.f32 0.6931472, %v982_v25  ;;  %v597_v31 = vmul.f32 0.00390625, %v547_v28 }
  0xde   : > { %v986_v32 = vpop.eup %985  ;;  %1003 = vpow2.f32 %v731_v26  ;;  %v737_v33 = vmul.f32 1.442695, %v688_v27  ;;  %v646_v34 = vmul.f32 0.6931472, %v984_v29  ;;  %v556_v35 = vpop.xlane.xlu1 %555 }
  0xdf   : > { %v988_v36 = vpop.eup %987  ;;  %779 = vst.msk [vmem:[%s1183_s17 + $0x58] sm:$0xff] %vm767_vm0, %v986_v32  ;;  %v687_v37 = vmul.f32 0.33333334, %v640_v30  ;;  %1005 = vlog2.f32 %v597_v31  ;;  %v600_v38 = vmul.f32 0.00390625, %v556_v35 }
  0xe0   : > { %v990_v39 = vpop.eup %989  ;;  %778 = vst.msk [vmem:[%s1183_s17 + $0x50] sm:$0xff] %vm767_vm0, %v988_v36  ;;  %1007 = vpow2.f32 %v737_v33  ;;  %v690_v40 = vmul.f32 0.33333334, %v646_v34  ;;  %v553_v41 = vpop.xlane.xlu0 %552 }
  0xe1   : > { %v735_v42 = vmul.f32 1.442695, %v687_v37  ;;  %v644_v43 = vmul.f32 0.6931472, %v990_v39  ;;  %1009 = vlog2.f32 %v600_v38  ;;  %v599_v44 = vmul.f32 0.00390625, %v553_v41 }
  0xe2   : > { %v992_v45 = vpop.eup %991  ;;  %v741_v46 = vmul.f32 1.442695, %v690_v40  ;;  %v562_v47 = vpop.xlane.xlu1 %561 }
  0xe3   : > { %v994_v48 = vpop.eup %993  ;;  %1011 = vpow2.f32 %v735_v42  ;;  %v689_v49 = vmul.f32 0.33333334, %v644_v43  ;;  %v650_v50 = vmul.f32 0.6931472, %v992_v45  ;;  %v602_v51 = vmul.f32 0.00390625, %v562_v47 }
  0xe4   : > { %v996_v52 = vpop.eup %995  ;;  %781 = vst.msk [vmem:[%s1183_s17 + $0x68] sm:$0xff] %vm767_vm0, %v994_v48  ;;  %1013 = vpow2.f32 %v741_v46 }
  0xe5   : > { %v998_v53 = vpop.eup %997  ;;  %780 = vst.msk [vmem:[%s1183_s17 + $0x60] sm:$0xff] %vm767_vm0, %v996_v52  ;;  %v739_v54 = vmul.f32 1.442695, %v689_v49  ;;  %v692_v55 = vmul.f32 0.33333334, %v650_v50  ;;  %1015 = vlog2.f32 %v599_v44  ;;  %v559_v56 = vpop.xlane.xlu0 %558 }
  0xe6   : > { %v1000_v57 = vpop.eup %999  ;;  %v648_v58 = vmul.f32 0.6931472, %v998_v53  ;;  %1017 = vlog2.f32 %v602_v51  ;;  %v601_v59 = vmul.f32 0.00390625, %v559_v56 }
  0xe7   : > { %v1002_v60 = vpop.eup %1001  ;;  %1019 = vpow2.f32 %v739_v54  ;;  %v745_v61 = vmul.f32 1.442695, %v692_v55  ;;  %v654_v62 = vmul.f32 0.6931472, %v1000_v57  ;;  %v568_v63 = vpop.xlane.xlu1 %567 }
  0xe8   : > { %v1004_v0 = vpop.eup %1003  ;;  %783 = vst.msk [vmem:[%s1183_s17 + $0x78] sm:$0xff] %vm767_vm0, %v1002_v60  ;;  %v691_v1 = vmul.f32 0.33333334, %v648_v58  ;;  %1021 = vlog2.f32 %v601_v59  ;;  %v604_v2 = vmul.f32 0.00390625, %v568_v63 }
  0xe9   : > { %v1006_v3 = vpop.eup %1005  ;;  %782 = vst.msk [vmem:[%s1183_s17 + $0x70] sm:$0xff] %vm767_vm0, %v1004_v0  ;;  %1023 = vpow2.f32 %v745_v61  ;;  %v694_v4 = vmul.f32 0.33333334, %v654_v62  ;;  %v565_v5 = vpop.xlane.xlu0 %564 }
  0xea   : > { %v1008_v6 = vpop.eup %1007  ;;  %v743_v7 = vmul.f32 1.442695, %v691_v1  ;;  %v652_v8 = vmul.f32 0.6931472, %v1006_v3  ;;  %1025 = vlog2.f32 %v604_v2  ;;  %v603_v9 = vmul.f32 0.00390625, %v565_v5 }
  0xeb   : > { %v1010_v10 = vpop.eup %1009  ;;  %785 = vst.msk [vmem:[%s1183_s17 + $0x88] sm:$0xff] %vm767_vm0, %v1008_v6  ;;  %v749_v11 = vmul.f32 1.442695, %v694_v4  ;;  %v574_v12 = vpop.xlane.xlu1 %573 }
  0xec   : > { %1027 = vpow2.f32 %v743_v7  ;;  %v693_v13 = vmul.f32 0.33333334, %v652_v8  ;;  %v658_v14 = vmul.f32 0.6931472, %v1010_v10  ;;  %v606_v15 = vmul.f32 0.00390625, %v574_v12 }
  0xed   : > { %v1012_v16 = vpop.eup %1011  ;;  %1029 = vpow2.f32 %v749_v11 }
  0xee   : > { %v1014_v17 = vpop.eup %1013  ;;  %784 = vst.msk [vmem:[%s1183_s17 + $0x80] sm:$0xff] %vm767_vm0, %v1012_v16  ;;  %v747_v18 = vmul.f32 1.442695, %v693_v13  ;;  %v696_v19 = vmul.f32 0.33333334, %v658_v14  ;;  %1031 = vlog2.f32 %v603_v9  ;;  %v571_v20 = vpop.xlane.xlu0 %570 }
  0xef   : > { %v1016_v21 = vpop.eup %1015  ;;  %787 = vst.msk [vmem:[%s1183_s17 + $0x98] sm:$0xff] %vm767_vm0, %v1014_v17  ;;  %1033 = vlog2.f32 %v606_v15  ;;  %v605_v22 = vmul.f32 0.00390625, %v571_v20 }
  0xf0   : > { %v1018_v23 = vpop.eup %1017  ;;  %1035 = vpow2.f32 %v747_v18  ;;  %v753_v24 = vmul.f32 1.442695, %v696_v19  ;;  %v656_v25 = vmul.f32 0.6931472, %v1016_v21 }
  0xf1   : > { %v1020_v26 = vpop.eup %1019  ;;  %v662_v27 = vmul.f32 0.6931472, %v1018_v23  ;;  %1037 = vlog2.f32 %v605_v22 }
  0xf2   : > { %v1022_v28 = vpop.eup %1021  ;;  %786 = vst.msk [vmem:[%s1183_s17 + $0x90] sm:$0xff] %vm767_vm0, %v1020_v26  ;;  %1039 = vpow2.f32 %v753_v24  ;;  %v695_v29 = vmul.f32 0.33333334, %v656_v25 }
  0xf3   : > { %v1024_v30 = vpop.eup %1023  ;;  %v698_v31 = vmul.f32 0.33333334, %v662_v27  ;;  %v660_v32 = vmul.f32 0.6931472, %v1022_v28 }
  0xf4   : > { %v1026_v33 = vpop.eup %1025  ;;  %789 = vst.msk [vmem:[%s1183_s17 + $0xa8] sm:$0xff] %vm767_vm0, %v1024_v30  ;;  %v751_v34 = vmul.f32 1.442695, %v695_v29 }
  0xf5   : > { %v757_v35 = vmul.f32 1.442695, %v698_v31  ;;  %v697_v36 = vmul.f32 0.33333334, %v660_v32  ;;  %v666_v37 = vmul.f32 0.6931472, %v1026_v33 }
  0xf6   : > { %v1028_v38 = vpop.eup %1027  ;;  %1041 = vpow2.f32 %v751_v34 }
  0xf7   : > { %v1030_v39 = vpop.eup %1029  ;;  %788 = vst.msk [vmem:[%s1183_s17 + $0xa0] sm:$0xff] %vm767_vm0, %v1028_v38  ;;  %1043 = vpow2.f32 %v757_v35  ;;  %v755_v40 = vmul.f32 1.442695, %v697_v36  ;;  %v700_v41 = vmul.f32 0.33333334, %v666_v37 }
  0xf8   : > { %v1032_v42 = vpop.eup %1031  ;;  %791 = vst.msk [vmem:[%s1183_s17 + $0xb8] sm:$0xff] %vm767_vm0, %v1030_v39 }
  0xf9   : > { %v1034_v43 = vpop.eup %1033  ;;  %1045 = vpow2.f32 %v755_v40  ;;  %v761_v44 = vmul.f32 1.442695, %v700_v41  ;;  %v664_v45 = vmul.f32 0.6931472, %v1032_v42 }
  0xfa   : > { %v1036_v46 = vpop.eup %1035  ;;  %v670_v47 = vmul.f32 0.6931472, %v1034_v43 }
  0xfb   : > { %v1038_v48 = vpop.eup %1037  ;;  %790 = vst.msk [vmem:[%s1183_s17 + $0xb0] sm:$0xff] %vm767_vm0, %v1036_v46  ;;  %1047 = vpow2.f32 %v761_v44  ;;  %v699_v49 = vmul.f32 0.33333334, %v664_v45 }
  0xfc   : > { %v1040_v50 = vpop.eup %1039  ;;  %v702_v51 = vmul.f32 0.33333334, %v670_v47  ;;  %v668_v52 = vmul.f32 0.6931472, %v1038_v48 }
  0xfd   : > { %793 = vst.msk [vmem:[%s1183_s17 + $0xc8] sm:$0xff] %vm767_vm0, %v1040_v50  ;;  %v759_v53 = vmul.f32 1.442695, %v699_v49 }
  0xfe   : > { %v765_v54 = vmul.f32 1.442695, %v702_v51  ;;  %v701_v55 = vmul.f32 0.33333334, %v668_v52 }
  0xff   : > { %1049 = vpow2.f32 %v759_v53 }
 0x100   : > { %v1042_v56 = vpop.eup %1041  ;;  %1051 = vpow2.f32 %v765_v54  ;;  %v763_v57 = vmul.f32 1.442695, %v701_v55 }
 0x101   : > { %v1044_v58 = vpop.eup %1043  ;;  %792 = vst.msk [vmem:[%s1183_s17 + $0xc0] sm:$0xff] %vm767_vm0, %v1042_v56 }
 0x102   : > { %795 = vst.msk [vmem:[%s1183_s17 + $0xd8] sm:$0xff] %vm767_vm0, %v1044_v58  ;;  %1053 = vpow2.f32 %v763_v57 }
 0x103   : > { %v1046_v59 = vpop.eup %1045 }
 0x104   : > { %794 = vst.msk [vmem:[%s1183_s17 + $0xd0] sm:$0xff] %vm767_vm0, %v1046_v59 }
 0x105   : > { %v1048_v60 = vpop.eup %1047 }
 0x106   : > { %797 = vst.msk [vmem:[%s1183_s17 + $0xe8] sm:$0xff] %vm767_vm0, %v1048_v60 }
 0x109   : > { %v1050_v61 = vpop.eup %1049 }
 0x10a   : > { %v1052_v62 = vpop.eup %1051  ;;  %796 = vst.msk [vmem:[%s1183_s17 + $0xe0] sm:$0xff] %vm767_vm0, %v1050_v61 }
 0x10b   : > { %799 = vst.msk [vmem:[%s1183_s17 + $0xf8] sm:$0xff] %vm767_vm0, %v1052_v62 }
 0x10c   : > { %v1054_v63 = vpop.eup %1053 }
 0x10d   : > { %798 = vst.msk [vmem:[%s1183_s17 + $0xf0] sm:$0xff] %vm767_vm0, %v1054_v63 }
 0x10e PF: > { %s11_s8 = sadd.s32 1, %s1077_s8   ;;  %s1260_s6 = smov %s1073_s7 }
 0x10f   : > { %p8_p5 = scmp.ge.s32.totalorder %s11_s8, 4   ;;  %s1261_s7 = smov %s1263_s9 }
 0x111   :  { %10 = sbr.rel (!%p8_p5) target bundleno = 2 (0x2), region = 54 }

</bundles_post_ra>
